<compile_context>
chip_gen: v5e
topology: v5e:2x2
jax: 0.10.0
libtpu: 0.0.40
codegen_flags: <defaults>
</compile_context>

<pallas_src>
import jax
import jax.numpy as jnp
from jax.experimental import pallas as pl
from jax.experimental.pallas import tpu as pltpu


def _cdiv(a, b):
    return -(-a // b)


def _round_up(a, b):
    return _cdiv(a, b) * b


def _make_kernel(split_first, tb, n_layers, act_dtype):
    """Kernel over one (TB, C, TN) activation block; weights/biases resident."""

    def kernel(*refs):
        out_ref = refs[-1]
        xyz_ref = refs[0]
        if split_first:
            feat_ref = refs[1]
            w_refs = refs[2:-1]
        else:
            feat_ref = None
            w_refs = refs[1:-1]

        for t in range(tb):  # static unroll over the batch sub-block
            wi = 0
            # layer 0: folded (conv1x1 * BN-scale); the xyz/features concat is
            # realized as a split matmul (no HBM concat, no transposes).
            h = jnp.dot(w_refs[wi][...], xyz_ref[t],
                        preferred_element_type=jnp.float32)
            wi += 1
            if split_first:
                h = h + jnp.dot(w_refs[wi][...], feat_ref[t],
                                preferred_element_type=jnp.float32)
                wi += 1
            h = jnp.maximum(h + w_refs[wi][...], 0.0)
            wi += 1
            # remaining layers
            for _ in range(1, n_layers):
                h = jnp.dot(w_refs[wi][...], h.astype(act_dtype),
                            preferred_element_type=jnp.float32)
                wi += 1
                h = jnp.maximum(h + w_refs[wi][...], 0.0)
                wi += 1
            out_ref[t] = h.astype(out_ref.dtype)

    return kernel


def pointnet_sa_forward(xyz, features, params):
    """PointNetSetAbstraction forward.

    xyz: (B, 3, N); features: (B, C, N) or None.
    params: sequence of (w, scale, shift) per MLP layer with w: (cin, cout),
            scale/shift: (cout,) -- inference BN + conv bias folded to affine.
    Returns (xyz, new_features) with new_features: (B, mlp[-1], N).
    """
    B, three, N = xyz.shape
    assert three == 3
    act_dtype = xyz.dtype
    act_bytes = jnp.dtype(act_dtype).itemsize

    n_layers = len(params)
    C0 = params[0][0].shape[0]
    C_out = params[-1][0].shape[1]
    C_widest = max(p[0].shape[1] for p in params)

    # Fold BN scale into the conv weights (exact: per-output-channel scale) and
    # transpose so the kernel computes out = W @ x on the channel-major layout.
    ws, bs = [], []
    for (w, scale, shift) in params:
        wf = w.astype(jnp.float32) * scale.astype(jnp.float32)[None, :]
        ws.append(wf.T.astype(act_dtype))                       # (cout, cin)
        bs.append(shift.reshape(-1, 1).astype(jnp.float32))     # (cout, 1)

    split_first = features is not None
    if split_first:
        C_feat = features.shape[1]
        assert C0 == 3 + C_feat
    else:
        assert C0 == 3

    weight_bytes = sum(int(a.size) * a.dtype.itemsize for a in ws + bs)

    def vmem_bytes(tn, tb):
        # double-buffered activation in/out blocks + resident weights/biases
        # + f32 intermediates headroom.
        return (2 * tb * tn * act_bytes * (C0 + C_out)
                + 2 * weight_bytes
                + 2 * tb * tn * 4 * (C_widest + C_out))

    VMEM_BUDGET = 24 * 1024 * 1024  # conservative: inside v7x 32 MiB scoped

    # --- tile selection -------------------------------------------------
    TN = min(2048, _round_up(N, 128))
    while TN > 128 and vmem_bytes(TN, 1) > VMEM_BUDGET:
        TN = _round_up(_cdiv(TN, 2), 128)
    # v7x has 2 TensorCores sharded over "parallel" grid axes: when B == 1,
    # make sure the N axis has >= 2 steps whenever N is big enough to split.
    if B == 1 and _cdiv(N, TN) < 2 and TN >= 256:
        TN = _round_up(_cdiv(TN, 2), 128)
    n_tiles = _cdiv(N, TN)

    # Small-N regime: amortize per-step overhead over several point clouds.
    TB = min(B, 8) if (n_tiles == 1 and B > 1) else 1
    while TB > 1 and vmem_bytes(TN, TB) > VMEM_BUDGET:
        TB = _cdiv(TB, 2)
    b_tiles = _cdiv(B, TB)

    vmem_limit = int(min(max(2 * vmem_bytes(TN, TB), 32 * 1024 * 1024),
                         48 * 1024 * 1024))

    # --- operands & specs -------------------------------------------------
    def act_spec(c):
        return pl.BlockSpec((TB, c, TN), lambda bi, ni: (bi, 0, ni))

    def w_spec(a):
        shape = a.shape
        return pl.BlockSpec(shape, lambda bi, ni: (0,) * len(shape))

    operands = [xyz.astype(act_dtype)]
    in_specs = [act_spec(3)]
    if split_first:
        operands.append(features.astype(act_dtype))
        in_specs.append(act_spec(C_feat))
        weight_ops = [ws[0][:, :3], ws[0][:, 3:], bs[0]]
    else:
        weight_ops = [ws[0], bs[0]]
    for i in range(1, n_layers):
        weight_ops += [ws[i], bs[i]]
    operands += weight_ops
    in_specs += [w_spec(a) for a in weight_ops]

    kernel = _make_kernel(split_first, TB, n_layers, act_dtype)

    out = pl.pallas_call(
        kernel,
        out_shape=jax.ShapeDtypeStruct((B, C_out, N), act_dtype),
        grid_spec=pltpu.PrefetchScalarGridSpec(
            num_scalar_prefetch=0,
            grid=(b_tiles, n_tiles),
            in_specs=in_specs,
            out_specs=act_spec(C_out),
        ),
        compiler_params=pltpu.CompilerParams(
            dimension_semantics=("parallel", "parallel"),
            vmem_limit_bytes=vmem_limit),
    )(*operands)

    return xyz, out


def make_params(key, in_channel, mlp, eps=1e-5):
    """Deterministic params: Conv2d(cin,cout,1) weight/bias + BatchNorm2d stats,
    with BN (inference) + conv bias expressed as per-channel (scale, shift)."""
    params = []
    last = in_channel
    for out_ch in mlp:
        key, kw, kb, kg, kbeta, km, kv = jax.random.split(key, 7)
        w = jax.random.normal(kw, (last, out_ch), jnp.float32) * 0.1   # (cin,cout)
        conv_b = jax.random.normal(kb, (out_ch,), jnp.float32) * 0.1
        gamma = 1.0 + 0.1 * jax.random.normal(kg, (out_ch,), jnp.float32)
        beta = 0.1 * jax.random.normal(kbeta, (out_ch,), jnp.float32)
        run_mean = 0.1 * jax.random.normal(km, (out_ch,), jnp.float32)
        run_var = jnp.abs(1.0 + 0.1 * jax.random.normal(kv, (out_ch,), jnp.float32))
        scale = gamma / jnp.sqrt(run_var + eps)
        shift = beta + (conv_b - run_mean) * scale
        params.append((w, scale, shift))
        last = out_ch
    return tuple(params)


def _reference(xyz, features, params):
    """Plain-JAX reference of the same folded forward (f32)."""
    x = xyz if features is None else jnp.concatenate([xyz, features], axis=1)
    x = jnp.transpose(x, (0, 2, 1)).astype(jnp.float32)        # (B, N, C0)
    for (w, scale, shift) in params:
        wf = w.astype(jnp.float32) * scale.astype(jnp.float32)[None, :]
        x = jnp.maximum(x @ wf + shift.astype(jnp.float32), 0.0)
    return jnp.transpose(x, (0, 2, 1))                          # (B, Cout, N)


if __name__ == "__main__":
    B, N, C_feat = 2, 16, 4
    in_channel = 3 + C_feat                                     # xyz concat features
    mlp = [16, 32]

    key = jax.random.PRNGKey(0)
    k_xyz, k_feat, k_p1, k_p2 = jax.random.split(key, 4)
    xyz = jax.random.normal(k_xyz, (B, 3, N), jnp.float32)
    features = jax.random.normal(k_feat, (B, C_feat, N), jnp.float32)
    params = make_params(k_p1, in_channel, mlp)

    # --- f32, with features ------------------------------------------------
    fwd = jax.jit(lambda a, b: pointnet_sa_forward(a, b, params))
    new_xyz, new_features = fwd(xyz, features)
    jax.block_until_ready(new_features)
    assert new_xyz.shape == (B, 3, N)
    assert new_features.shape == (B, mlp[-1], N)
    assert new_features.dtype == xyz.dtype
    ref = _reference(xyz, features, params)
    err = float(jnp.max(jnp.abs(new_features - ref)))
    assert err < 2e-5, err

    # --- f32, no features path ----------------------------------------------
    params3 = make_params(k_p2, 3, mlp)
    _, nf3 = jax.jit(lambda a: pointnet_sa_forward(a, None, params3))(xyz)
    jax.block_until_ready(nf3)
    ref3 = _reference(xyz, None, params3)
    err3 = float(jnp.max(jnp.abs(nf3 - ref3)))
    assert err3 < 2e-5, err3

    # --- bf16 activations end-to-end (loose tolerance) ----------------------
    _, nf_bf16 = jax.jit(lambda a, b: pointnet_sa_forward(a, b, params))(
        xyz.astype(jnp.bfloat16), features.astype(jnp.bfloat16))
    jax.block_until_ready(nf_bf16)
    assert nf_bf16.dtype == jnp.bfloat16
    err_bf16 = float(jnp.max(jnp.abs(nf_bf16.astype(jnp.float32) - ref)))
    assert err_bf16 < 0.1, err_bf16

    print("KERNEL_OK")
</pallas_src>

<mosaic_0001>
module attributes {stable_mosaic.version = 11 : i64} {
  func.func @kernel(%arg0: i32, %arg1: i32, %arg2: memref<2x3x128xf32, #tpu.memory_space<vmem>>, %arg3: memref<2x4x128xf32, #tpu.memory_space<vmem>>, %arg4: memref<16x3xf32, #tpu.memory_space<vmem>>, %arg5: memref<16x4xf32, #tpu.memory_space<vmem>>, %arg6: memref<16x1xf32, #tpu.memory_space<vmem>>, %arg7: memref<32x16xf32, #tpu.memory_space<vmem>>, %arg8: memref<32x1xf32, #tpu.memory_space<vmem>>, %arg9: memref<2x32x128xf32, #tpu.memory_space<vmem>>) attributes {dimension_semantics = [#tpu.dimension_semantics<parallel>, #tpu.dimension_semantics<parallel>], iteration_bounds = array<i64: 1, 1>, scalar_prefetch = 0 : i64, scratch_operands = 0 : i64, tpu.core_type = #tpu.core_type<tc>, window_params = [{transform_indices = @transform_0, window_bounds = array<i64: 2, 3, 128>}, {transform_indices = @transform_1, window_bounds = array<i64: 2, 4, 128>}, {pipeline_mode = #tpu.pipeline_mode<synchronous>, transform_indices = @transform_2, window_bounds = array<i64: 16, 3>}, {pipeline_mode = #tpu.pipeline_mode<synchronous>, transform_indices = @transform_3, window_bounds = array<i64: 16, 4>}, {pipeline_mode = #tpu.pipeline_mode<synchronous>, transform_indices = @transform_4, window_bounds = array<i64: 16, 1>}, {pipeline_mode = #tpu.pipeline_mode<synchronous>, transform_indices = @transform_5, window_bounds = array<i64: 32, 16>}, {pipeline_mode = #tpu.pipeline_mode<synchronous>, transform_indices = @transform_6, window_bounds = array<i64: 32, 1>}, {transform_indices = @transform_7, window_bounds = array<i64: 2, 32, 128>}]} {
    %c0 = arith.constant 0 : index
    %c0_0 = arith.constant 0 : index
    %0 = vector.load %arg4[%c0, %c0_0] : memref<16x3xf32, #tpu.memory_space<vmem>>, vector<16x3xf32>
    %c0_1 = arith.constant 0 : index
    %c0_2 = arith.constant 0 : index
    %c0_3 = arith.constant 0 : index
    %1 = vector.load %arg2[%c0_1, %c0_2, %c0_3] : memref<2x3x128xf32, #tpu.memory_space<vmem>>, vector<1x3x128xf32>
    %2 = vector.shape_cast %1 : vector<1x3x128xf32> to vector<3x128xf32>
    %cst = arith.constant dense<0.000000e+00> : vector<16x128xf32>
    %3 = tpu.matmul %0, %2, %cst {dimension_numbers = #tpu.dot_dimension_numbers<[1], [0], [0], [1], [0, 0, 1, 1], [], []>} : vector<16x3xf32>, vector<3x128xf32>, vector<16x128xf32> -> vector<16x128xf32>
    %c0_4 = arith.constant 0 : index
    %c0_5 = arith.constant 0 : index
    %4 = vector.load %arg5[%c0_4, %c0_5] : memref<16x4xf32, #tpu.memory_space<vmem>>, vector<16x4xf32>
    %c0_6 = arith.constant 0 : index
    %c0_7 = arith.constant 0 : index
    %c0_8 = arith.constant 0 : index
    %5 = vector.load %arg3[%c0_6, %c0_7, %c0_8] : memref<2x4x128xf32, #tpu.memory_space<vmem>>, vector<1x4x128xf32>
    %6 = vector.shape_cast %5 : vector<1x4x128xf32> to vector<4x128xf32>
    %cst_9 = arith.constant dense<0.000000e+00> : vector<16x128xf32>
    %7 = tpu.matmul %4, %6, %cst_9 {dimension_numbers = #tpu.dot_dimension_numbers<[1], [0], [0], [1], [0, 0, 1, 1], [], []>} : vector<16x4xf32>, vector<4x128xf32>, vector<16x128xf32> -> vector<16x128xf32>
    %8 = arith.addf %3, %7 : vector<16x128xf32>
    %c0_10 = arith.constant 0 : index
    %c0_11 = arith.constant 0 : index
    %9 = vector.load %arg6[%c0_10, %c0_11] : memref<16x1xf32, #tpu.memory_space<vmem>>, vector<16x1xf32>
    %10 = vector.broadcast %9 : vector<16x1xf32> to vector<16x128xf32>
    %11 = arith.addf %8, %10 : vector<16x128xf32>
    %cst_12 = arith.constant 0.000000e+00 : f32
    %12 = vector.broadcast %cst_12 : f32 to vector<16x128xf32>
    %13 = arith.maximumf %11, %12 : vector<16x128xf32>
    %c0_13 = arith.constant 0 : index
    %c0_14 = arith.constant 0 : index
    %14 = vector.load %arg7[%c0_13, %c0_14] : memref<32x16xf32, #tpu.memory_space<vmem>>, vector<32x16xf32>
    %cst_15 = arith.constant dense<0.000000e+00> : vector<32x128xf32>
    %15 = tpu.matmul %14, %13, %cst_15 {dimension_numbers = #tpu.dot_dimension_numbers<[1], [0], [0], [1], [0, 0, 1, 1], [], []>} : vector<32x16xf32>, vector<16x128xf32>, vector<32x128xf32> -> vector<32x128xf32>
    %c0_16 = arith.constant 0 : index
    %c0_17 = arith.constant 0 : index
    %16 = vector.load %arg8[%c0_16, %c0_17] : memref<32x1xf32, #tpu.memory_space<vmem>>, vector<32x1xf32>
    %17 = vector.broadcast %16 : vector<32x1xf32> to vector<32x128xf32>
    %18 = arith.addf %15, %17 : vector<32x128xf32>
    %cst_18 = arith.constant 0.000000e+00 : f32
    %19 = vector.broadcast %cst_18 : f32 to vector<32x128xf32>
    %20 = arith.maximumf %18, %19 : vector<32x128xf32>
    %c0_19 = arith.constant 0 : index
    %c0_20 = arith.constant 0 : index
    %c0_21 = arith.constant 0 : index
    %21 = vector.load %arg9[%c0_19, %c0_20, %c0_21] : memref<2x32x128xf32, #tpu.memory_space<vmem>>, vector<1x32x128xf32>
    %22 = vector.shape_cast %21 : vector<1x32x128xf32> to vector<32x128xf32>
    %23 = vector.shape_cast %20 : vector<32x128xf32> to vector<1x32x128xf32>
    tpu.vector_store %arg9[%c0_19, %c0_20, %c0_21], %23 {strides = array<i32>} : memref<2x32x128xf32, #tpu.memory_space<vmem>>, vector<1x32x128xf32>,
    %c0_22 = arith.constant 0 : index
    %c0_23 = arith.constant 0 : index
    %24 = vector.load %arg4[%c0_22, %c0_23] : memref<16x3xf32, #tpu.memory_space<vmem>>, vector<16x3xf32>
    %c1 = arith.constant 1 : index
    %c0_24 = arith.constant 0 : index
    %c0_25 = arith.constant 0 : index
    %25 = vector.load %arg2[%c1, %c0_24, %c0_25] : memref<2x3x128xf32, #tpu.memory_space<vmem>>, vector<1x3x128xf32>
    %26 = vector.shape_cast %25 : vector<1x3x128xf32> to vector<3x128xf32>
    %cst_26 = arith.constant dense<0.000000e+00> : vector<16x128xf32>
    %27 = tpu.matmul %24, %26, %cst_26 {dimension_numbers = #tpu.dot_dimension_numbers<[1], [0], [0], [1], [0, 0, 1, 1], [], []>} : vector<16x3xf32>, vector<3x128xf32>, vector<16x128xf32> -> vector<16x128xf32>
    %c0_27 = arith.constant 0 : index
    %c0_28 = arith.constant 0 : index
    %28 = vector.load %arg5[%c0_27, %c0_28] : memref<16x4xf32, #tpu.memory_space<vmem>>, vector<16x4xf32>
    %c1_29 = arith.constant 1 : index
    %c0_30 = arith.constant 0 : index
    %c0_31 = arith.constant 0 : index
    %29 = vector.load %arg3[%c1_29, %c0_30, %c0_31] : memref<2x4x128xf32, #tpu.memory_space<vmem>>, vector<1x4x128xf32>
    %30 = vector.shape_cast %29 : vector<1x4x128xf32> to vector<4x128xf32>
    %cst_32 = arith.constant dense<0.000000e+00> : vector<16x128xf32>
    %31 = tpu.matmul %28, %30, %cst_32 {dimension_numbers = #tpu.dot_dimension_numbers<[1], [0], [0], [1], [0, 0, 1, 1], [], []>} : vector<16x4xf32>, vector<4x128xf32>, vector<16x128xf32> -> vector<16x128xf32>
    %32 = arith.addf %27, %31 : vector<16x128xf32>
    %c0_33 = arith.constant 0 : index
    %c0_34 = arith.constant 0 : index
    %33 = vector.load %arg6[%c0_33, %c0_34] : memref<16x1xf32, #tpu.memory_space<vmem>>, vector<16x1xf32>
    %34 = vector.broadcast %33 : vector<16x1xf32> to vector<16x128xf32>
    %35 = arith.addf %32, %34 : vector<16x128xf32>
    %cst_35 = arith.constant 0.000000e+00 : f32
    %36 = vector.broadcast %cst_35 : f32 to vector<16x128xf32>
    %37 = arith.maximumf %35, %36 : vector<16x128xf32>
    %c0_36 = arith.constant 0 : index
    %c0_37 = arith.constant 0 : index
    %38 = vector.load %arg7[%c0_36, %c0_37] : memref<32x16xf32, #tpu.memory_space<vmem>>, vector<32x16xf32>
    %cst_38 = arith.constant dense<0.000000e+00> : vector<32x128xf32>
    %39 = tpu.matmul %38, %37, %cst_38 {dimension_numbers = #tpu.dot_dimension_numbers<[1], [0], [0], [1], [0, 0, 1, 1], [], []>} : vector<32x16xf32>, vector<16x128xf32>, vector<32x128xf32> -> vector<32x128xf32>
    %c0_39 = arith.constant 0 : index
    %c0_40 = arith.constant 0 : index
    %40 = vector.load %arg8[%c0_39, %c0_40] : memref<32x1xf32, #tpu.memory_space<vmem>>, vector<32x1xf32>
    %41 = vector.broadcast %40 : vector<32x1xf32> to vector<32x128xf32>
    %42 = arith.addf %39, %41 : vector<32x128xf32>
    %cst_41 = arith.constant 0.000000e+00 : f32
    %43 = vector.broadcast %cst_41 : f32 to vector<32x128xf32>
    %44 = arith.maximumf %42, %43 : vector<32x128xf32>
    %c1_42 = arith.constant 1 : index
    %c0_43 = arith.constant 0 : index
    %c0_44 = arith.constant 0 : index
    %45 = vector.load %arg9[%c1_42, %c0_43, %c0_44] : memref<2x32x128xf32, #tpu.memory_space<vmem>>, vector<1x32x128xf32>
    %46 = vector.shape_cast %45 : vector<1x32x128xf32> to vector<32x128xf32>
    %47 = vector.shape_cast %44 : vector<32x128xf32> to vector<1x32x128xf32>
    tpu.vector_store %arg9[%c1_42, %c0_43, %c0_44], %47 {strides = array<i32>} : memref<2x32x128xf32, #tpu.memory_space<vmem>>, vector<1x32x128xf32>,
    return
  }
  func.func @transform_0(%arg0: i32, %arg1: i32) -> (i32, i32, i32) {
    %c0_i32 = arith.constant 0 : i32
    %c0_i32_0 = arith.constant 0 : i32
    return %arg0, %c0_i32, %arg1 : i32, i32, i32
  }
  func.func @transform_1(%arg0: i32, %arg1: i32) -> (i32, i32, i32) {
    %c0_i32 = arith.constant 0 : i32
    %c0_i32_0 = arith.constant 0 : i32
    return %arg0, %c0_i32, %arg1 : i32, i32, i32
  }
  func.func @transform_2(%arg0: i32, %arg1: i32) -> (i32, i32) {
    %c0_i32 = arith.constant 0 : i32
    %c0_i32_0 = arith.constant 0 : i32
    %c0_i32_1 = arith.constant 0 : i32
    return %c0_i32, %c0_i32_0 : i32, i32
  }
  func.func @transform_3(%arg0: i32, %arg1: i32) -> (i32, i32) {
    %c0_i32 = arith.constant 0 : i32
    %c0_i32_0 = arith.constant 0 : i32
    %c0_i32_1 = arith.constant 0 : i32
    return %c0_i32, %c0_i32_0 : i32, i32
  }
  func.func @transform_4(%arg0: i32, %arg1: i32) -> (i32, i32) {
    %c0_i32 = arith.constant 0 : i32
    %c0_i32_0 = arith.constant 0 : i32
    %c0_i32_1 = arith.constant 0 : i32
    return %c0_i32, %c0_i32_0 : i32, i32
  }
  func.func @transform_5(%arg0: i32, %arg1: i32) -> (i32, i32) {
    %c0_i32 = arith.constant 0 : i32
    %c0_i32_0 = arith.constant 0 : i32
    %c0_i32_1 = arith.constant 0 : i32
    return %c0_i32, %c0_i32_0 : i32, i32
  }
  func.func @transform_6(%arg0: i32, %arg1: i32) -> (i32, i32) {
    %c0_i32 = arith.constant 0 : i32
    %c0_i32_0 = arith.constant 0 : i32
    %c0_i32_1 = arith.constant 0 : i32
    return %c0_i32, %c0_i32_0 : i32, i32
  }
  func.func @transform_7(%arg0: i32, %arg1: i32) -> (i32, i32, i32) {
    %c0_i32 = arith.constant 0 : i32
    %c0_i32_0 = arith.constant 0 : i32
    return %arg0, %c0_i32, %arg1 : i32, i32, i32
  }
}

</mosaic_0001>

<bundles_post_ra>
// kernel: _lambda_.1
= control target key start
LH: loop header
LB: loop body
LE: loop exit
PB: predicated region body
PF: predicated region fallthrough
CT: control target
= control target key end

     0   :  { %12 = vsyncpa [#allocation3], 0  ;;  %s742_s0 = inlined_call_operand.vmem [shape: f32[2,3,16], index: 0, kind: input, shape index: {}]   ;;  %s743_s1 = inlined_call_operand.hbm [shape: f32[2,4,16], index: 1, kind: input, shape index: {}]   ;;  %s744_s2 = inlined_call_operand.vmem [shape: f32[16,3], index: 2, kind: input, shape index: {}]   ;;  %s745_s3 = inlined_call_operand.hbm [shape: f32[16,4], index: 3, kind: input, shape index: {}]   ;;  %s746_s4 = inlined_call_operand.hbm [shape: f32[16,1], index: 4, kind: input, shape index: {}]   ;;  %s747_s5 = inlined_call_operand.hbm [shape: f32[32,16], index: 5, kind: input, shape index: {}]   ;;  %s748_s6 = inlined_call_operand.hbm [shape: f32[32,1], index: 6, kind: input, shape index: {}]   ;;  %s749_s7 = inlined_call_operand.vmem [shape: f32[2,32,16], index: 7, kind: output, shape index: {}]  }
   0x1   :  { %13 = vsyncpa [#allocation5], 0  ;;  %s36_s26 = sshll.u32 %s745_s3, 4  ;;  %s37_s26 = int_to_ptr.hbm [resolvable:$true] %s36_s26 }
   0x2   :  { %14 = vsyncpa [#allocation8], 0  ;;  %s611_s27 = smov [#allocation4]   ;;  %s62_s8 = sshll.u32 %s747_s5, 4  ;;  %s63_s8 = int_to_ptr.hbm [resolvable:$true] %s62_s8 }
   0x3   :  { %s38_s28 = sshll.u32 %s611_s27, 4  ;;  %s612_s9 = smov 128   ;;  %s39_s28 = int_to_ptr.vmem [resolvable:$true] %s38_s28 }
   0x4   :  { %s613_s10 = smov 8   ;;  %s614_s11 = smov [#allocation7]  }
   0x5   :  { %44 = dma.hbm_to_vmem [thread:$0]  %s37_s26, 256, %s39_s28, [#allocation5], %s612_s9, %s612_s9, %s613_s10  }
   0x6   :  { %s64_s12 = sshll.u32 %s614_s11, 4  ;;  %s21_s14 = sshll.u32 %s743_s1, 4  ;;  %s65_s12 = int_to_ptr.vmem [resolvable:$true] %s64_s12  ;;  %s22_s14 = int_to_ptr.hbm [resolvable:$true] %s21_s14 }
   0x7   :  { %70 = dma.hbm_to_vmem [thread:$0]  %s63_s8, 512, %s65_s12, [#allocation8], %s612_s9, %s612_s9, %s613_s10  }
   0x8   :  { %s615_s5 = smov [#allocation2]   ;;  %s49_s18 = sshll.u32 %s746_s4, 4  ;;  %s50_s18 = int_to_ptr.hbm [resolvable:$true] %s49_s18 }
   0x9   :  { %s23_s15 = sshll.u32 %s615_s5, 4  ;;  %s616_s19 = smov 64   ;;  %s24_s15 = int_to_ptr.vmem [resolvable:$true] %s23_s15 }
   0xa   :  { %s617_s20 = smov 4   ;;  %s618_s21 = smov [#allocation6]  }
   0xb   :  { %29 = dma.hbm_to_vmem [thread:$0]  %s22_s14, 128, %s24_s15, [#allocation3], %s616_s19, %s616_s19, %s617_s20  }
   0xc   :  { %s51_s22 = sshll.u32 %s618_s21, 4  ;;  %s75_s24 = sshll.u32 %s748_s6, 4  ;;  %s52_s22 = int_to_ptr.vmem [resolvable:$true] %s51_s22  ;;  %s76_s24 = int_to_ptr.hbm [resolvable:$true] %s75_s24 }
   0xd   :  { %57 = dma.hbm_to_vmem [thread:$0]  %s50_s18, 256, %s52_s22, [#allocation5], %s612_s9, %s612_s9, %s613_s10  }
   0xe   :  { %s619_s25 = smov [#allocation9]  }
   0xf   :  { %s77_s26 = sshll.u32 %s619_s25, 4  ;;  %s78_s26 = int_to_ptr.vmem [resolvable:$true] %s77_s26 }
  0x10   :  { %83 = dma.hbm_to_vmem [thread:$0]  %s76_s24, 512, %s78_s26, [#allocation8], %s612_s9, %s612_s9, %s613_s10  }
  0x11   :  { %605 = dma.done.wait [#allocation3], 128  }
  0x12   :  { %606 = vsyncadd [#allocation3], 4294967168 }
  0x13   :  { %607 = dma.done.wait [#allocation5], 512  }
  0x14   :  { %608 = vsyncadd [#allocation5], 4294966784 }
  0x15   :  { %609 = dma.done.wait [#allocation8], 1024  }
  0x16   :  { %610 = vsyncadd [#allocation8], 4294966272  ;;  %v620_v0 = vmov 0   ;;  %vm117_vm0 = vcmask 1043456   ;;  %vm151_vm1 = vcmask 1042432   ;;  %vm110_vm2 = vcmask 31744  }
  0x17   :  { %482 = vset.pattern.permute.xlu0 %v620_v0  ;;  %483 = vset.pattern.permute.xlu1 %v620_v0  ;;  %vm144_vm3 = vcmask 23552   ;;  %v109_v1 = vld [vmem:[#allocation2] sm:$0xf]  ;;  %v107_v3 = vld [vmem:[#allocation4] sm:$0xff]  ;;  %v279_v6 = vld [vmem:[#allocation2 + $0x4] sm:$0xf] }
  0x18   :  { %484 = vset.pattern.permute.xlu2 %v620_v0  ;;  %v106_v2 = vld [vmem:[%s742_s0] sm:$0x7]  ;;  %445 = vmatpush.msk.msra.mxu0 %vm117_vm0, %v109_v1  ;;  %v455_v7 = vld [vmem:[%s742_s0 + $0x4] sm:$0x7]  ;;  %v108_v8 = vld [vmem:[#allocation4 + $0x8] sm:$0xff]  ;;  %vm222_vm4 = vcmask 130048  }
  0x19   :  { %448 = vmatpush.msk.msra.mxu1 %vm151_vm1, %v106_v2  ;;  %v104_v4 = vld [vmem:[%s744_s2] sm:$0xff]  ;;  %446 = vmatmul.msk.f32.vlgmr.msra.gmra.mxu0 %vm110_vm2, %v107_v3  ;;  %v105_v9 = vld [vmem:[%s744_s2 + $0x8] sm:$0xff]  ;;  %v178_v10 = vld [vmem:[#allocation6] sm:$0xff] }
  0x1a   :  { %v179_v5 = vld [vmem:[#allocation6 + $0x8] sm:$0xff]  ;;  %449 = vmatmul.msk.f32.vlgmr.msra.gmra.mxu1 %vm144_vm3, %v104_v4  ;;  %456 = vmatpush.msk.msra.mxu3 %vm117_vm0, %v279_v6  ;;  %v200_v11 = vld [vmem:[#allocation9 + $0x10] sm:$0xff]  ;;  %v365_v13 = vld [vmem:[#allocation9 + $0x8] sm:$0xff] }
  0x1b   :  { %187 = vperm.xlu0 %482, %v179_v5   ;;  %457 = vmatmul.msk.f32.vlgmr.msra.gmra.mxu3 %vm110_vm2, %v107_v3  ;;  %v201_v12 = vld [vmem:[#allocation9 + $0x18] sm:$0xff]  ;;  %v198_v17 = vld [vmem:[#allocation9] sm:$0xff]  ;;  %v195_v33 = vld [vmem:[#allocation7 + $0x8] sm:$0xff] }
  0x1c   :  { %353 = vperm.xlu1 %483, %v179_v5   ;;  %459 = vmatpush.msk.msrb.mxu0 %vm151_vm1, %v455_v7  ;;  %v194_v28 = vld [vmem:[#allocation7] sm:$0xff]  ;;  %v196_v41 = vld [vmem:[#allocation7 + $0x10] sm:$0xff]  ;;  %v197_v42 = vld [vmem:[#allocation7 + $0x18] sm:$0xff] }
  0x1d   :  { %204 = vperm.xlu2 %484, %v198_v17  }
  0x21   :  { %447 = vmatmul.msk.f32.gmra.mxu0 %vm110_vm2, %v108_v8 }
  0x22   :  { %450 = vmatmul.msk.f32.gmra.mxu1 %vm144_vm3, %v105_v9 }
  0x23   :  { %182 = vperm.xlu0 %482, %v178_v10   ;;  %458 = vmatmul.msk.f32.gmra.mxu3 %vm110_vm2, %v108_v8 }
  0x24   :  { %348 = vperm.xlu1 %483, %v178_v10  }
  0x25   :  { %209 = vperm.xlu2 %484, %v365_v13  }
  0x29   :  { %460 = vmatmul.msk.f32.vlgmr.msrb.gmra.mxu0 %vm144_vm3, %v104_v4 }
  0x2b   :  { %214 = vperm.xlu0 %482, %v200_v11  }
  0x2c   :  { %219 = vperm.xlu1 %483, %v201_v12  }
  0x2d   :  { %370 = vperm.xlu2 %484, %v198_v17  }
  0x31   :  { %461 = vmatmul.msk.f32.gmra.mxu0 %vm144_vm3, %v105_v9 }
  0x33   :  { %375 = vperm.xlu0 %482, %v365_v13  }
  0x34   :  { %380 = vperm.xlu1 %483, %v200_v11  }
  0x35   :  { %385 = vperm.xlu2 %484, %v201_v12  }
  0x77   :  { %v205_v43 = vpop.permute.xlu2 %204 }
  0x7f   :  { %v210_v44 = vpop.permute.xlu2 %209 }
  0x87   :  { %v371_v52 = vpop.permute.xlu2 %370 }
  0x8d   :  { %v188_v14 = vpop.permute.xlu0 %187 }
  0x8e   :  { %v354_v29 = vpop.permute.xlu1 %353 }
  0x8f   :  { %v386_v5 = vpop.permute.xlu2 %385 }
  0x95   :  { %v183_v22 = vpop.permute.xlu0 %182 }
  0x96   :  { %v138_v15 = vpop.f32.mrf.mxu0  ;;  %v349_v36 = vpop.permute.xlu1 %348 }
  0x97   :  { %v172_v16 = vpop.f32.mrf.mxu1 }
  0x98   :  { %v173_v18 = vadd.f32 %v172_v16, %v138_v15 }
  0x9a   :  { %v190_v23 = vadd.f32 %v183_v22, %v173_v18 }
  0x9c   :  { %v192_v27 = vmax.f32 %v190_v23, 0.0 }
  0x9d   :  { %v215_v49 = vpop.permute.xlu0 %214 }
  0x9e   :  { %v141_v19 = vpop.f32.mrf.mxu0  ;;  %v306_v25 = vpop.f32.mrf.mxu3 }
  0x9f   :  { %v175_v20 = vpop.f32.mrf.mxu1  ;;  %v220_v48 = vpop.permute.xlu1 %219 }
  0xa0   :  { %v176_v21 = vadd.f32 %v175_v20, %v141_v19 }
  0xa2   :  { %v191_v24 = vadd.f32 %v188_v14, %v176_v21 }
  0xa4   :  { %v193_v26 = vmax.f32 %v191_v24, 0.0 }
  0xa5   :  { %v376_v61 = vpop.permute.xlu0 %375 }
  0xa6   :  { %249 = vmatpush.msra.mxu2 %v193_v26  ;;  %v338_v30 = vpop.f32.mrf.mxu0  ;;  %v309_v31 = vpop.f32.mrf.mxu3 }
  0xa7   :  { %v339_v32 = vadd.f32 %v338_v30, %v306_v25  ;;  %v381_v58 = vpop.permute.xlu1 %380 }
  0xa8   :  { %250 = vmatpush.msra.mxu2 %v192_v27 }
  0xa9   :  { %451 = vmatmul.msk.f32.vlgmr.msra.gmra.mxu2 %vm222_vm4, %v194_v28  ;;  %v356_v38 = vadd.f32 %v349_v36, %v339_v32 }
  0xab   :  { %v358_v40 = vmax.f32 %v356_v38, 0.0 }
  0xae   :  { %v341_v34 = vpop.f32.mrf.mxu0 }
  0xaf   :  { %v342_v35 = vadd.f32 %v341_v34, %v309_v31 }
  0xb1   :  { %452 = vmatmul.msk.f32.gmra.mxu2 %vm222_vm4, %v195_v33  ;;  %v357_v37 = vadd.f32 %v354_v29, %v342_v35 }
  0xb3   :  { %v359_v39 = vmax.f32 %v357_v37, 0.0 }
  0xb5   :  { %414 = vmatpush.msrb.mxu1 %v359_v39  ;;  %470 = vmatpush.msrb.mxu3 %v359_v39 }
  0xb7   :  { %415 = vmatpush.msrb.mxu1 %v358_v40  ;;  %471 = vmatpush.msrb.mxu3 %v358_v40 }
  0xb8   :  { %462 = vmatmul.msk.f32.vlgmr.msrb.gmra.mxu1 %vm222_vm4, %v194_v28  ;;  %464 = vmatmul.msk.f32.vlgmr.msrb.gmra.mxu3 %vm222_vm4, %v196_v41 }
  0xb9   :  { %453 = vmatmul.msk.f32.gmra.mxu2 %vm222_vm4, %v196_v41 }
  0xc0   :  { %463 = vmatmul.msk.f32.gmra.mxu1 %vm222_vm4, %v195_v33  ;;  %465 = vmatmul.msk.f32.gmra.mxu3 %vm222_vm4, %v197_v42 }
  0xc1   :  { %454 = vmatmul.msk.f32.gmra.mxu2 %vm222_vm4, %v197_v42 }
 0x12c   :  { %v252_v45 = vpop.f32.mrf.mxu2 }
 0x12d   :  { %v253_v46 = vadd.f32 %v252_v45, %v205_v43 }
 0x12f   :  { %v264_v47 = vmax.f32 %v253_v46, 0.0 }
 0x131   :  { %268 = vst [vmem:[%s749_s7] sm:$0xff] %v264_v47 }
 0x134   :  { %v255_v50 = vpop.f32.mrf.mxu2 }
 0x135   :  { %v256_v51 = vadd.f32 %v255_v50, %v210_v44  ;;  %v417_v53 = vpop.f32.mrf.mxu1 }
 0x136   :  { %v418_v55 = vadd.f32 %v417_v53, %v371_v52 }
 0x137   :  { %v265_v54 = vmax.f32 %v256_v51, 0.0 }
 0x138   :  { %v429_v56 = vmax.f32 %v418_v55, 0.0 }
 0x139   :  { %269 = vst [vmem:[%s749_s7 + $0x8] sm:$0xff] %v265_v54 }
 0x13a   :  { %466 = vst [vmem:[%s749_s7 + $0x20] sm:$0xff] %v429_v56 }
 0x13b   :  { %v423_v60 = vpop.f32.mrf.mxu3 }
 0x13c   :  { %v258_v57 = vpop.f32.mrf.mxu2  ;;  %v424_v62 = vadd.f32 %v423_v60, %v381_v58 }
 0x13d   :  { %v259_v59 = vadd.f32 %v258_v57, %v215_v49  ;;  %v420_v63 = vpop.f32.mrf.mxu1 }
 0x13e   :  { %v421_v1 = vadd.f32 %v420_v63, %v376_v61  ;;  %v431_v2 = vmax.f32 %v424_v62, 0.0 }
 0x13f   :  { %v266_v0 = vmax.f32 %v259_v59, 0.0 }
 0x140   :  { %v430_v3 = vmax.f32 %v421_v1, 0.0  ;;  %468 = vst [vmem:[%s749_s7 + $0x30] sm:$0xff] %v431_v2 }
 0x141   :  { %270 = vst [vmem:[%s749_s7 + $0x10] sm:$0xff] %v266_v0 }
 0x142   :  { %467 = vst [vmem:[%s749_s7 + $0x28] sm:$0xff] %v430_v3 }
 0x143   :  { %v426_v7 = vpop.f32.mrf.mxu3 }
 0x144   :  { %v261_v4 = vpop.f32.mrf.mxu2  ;;  %v427_v8 = vadd.f32 %v426_v7, %v386_v5 }
 0x145   :  { %v262_v6 = vadd.f32 %v261_v4, %v220_v48 }
 0x146   :  { %v432_v10 = vmax.f32 %v427_v8, 0.0 }
 0x147   :  { %v267_v9 = vmax.f32 %v262_v6, 0.0 }
 0x148   :  { %469 = vst [vmem:[%s749_s7 + $0x38] sm:$0xff] %v432_v10 }
 0x149   :  { %271 = vst [vmem:[%s749_s7 + $0x18] sm:$0xff] %v267_v9 }
 0x14a   :  { %442 = vsyncpa [#allocation3], 1 }
 0x14b   :  { %443 = vsyncpa [#allocation5], 1 }
 0x14c   :  { %444 = vsyncpa [#allocation8], 1 }

</bundles_post_ra>
